<compile_context>
chip_gen: v7x
topology: tpu7x:2x2x1
jax: 0.10.0
libtpu: 0.0.40
codegen_flags: <defaults>
</compile_context>

<pallas_src>
import math

import jax
import jax.numpy as jnp
from jax import lax
from jax.experimental import pallas as pl
from jax.experimental.pallas import tpu as pltpu

OBS_DIM = 16
HIDDEN = 32
ACT_DIM = 4

_HALF_LOG_2PI = 0.5 * math.log(2.0 * math.pi)
_NT = (((1,), (1,)), ((), ()))      # contract last dim of both operands: A @ B^T on the MXU
_TB_CAP = 4096                      # ~9 MiB of double-buffered VMEM at this tile; fits v5e/v6e/v7x defaults


def _mlp_mu(s_ref, w1_ref, b1_ref, w2_ref, b2_ref, w3_ref, b3_ref):
    """MLP body. Input block is natural-layout (TB, OBS); activations are kept
    (feature, TB) so the batch sits on the lane axis and outputs are lane-dense."""
    x = s_ref[...]                                                     # (TB, OBS)
    # Contract the feature axis of the untransposed block against w1's `in` axis (A·Bᵀ)
    # -> (HIDDEN, TB); avoids any wrapper/XLA transpose pass over `state`.
    h1 = jnp.tanh(lax.dot_general(w1_ref[...], x, _NT,
                                  preferred_element_type=jnp.float32) + b1_ref[...])
    h2 = jnp.tanh(jnp.dot(w2_ref[...], h1,
                          preferred_element_type=jnp.float32) + b2_ref[...])
    return jnp.dot(w3_ref[...], h2,
                   preferred_element_type=jnp.float32) + b3_ref[...]   # (ACT, TB)


def _actor_mu_kernel(s_ref, w1_ref, b1_ref, w2_ref, b2_ref, w3_ref, b3_ref, mu_ref):
    # Sampling / rollout path: no actions, no log-prob work.
    mu_ref[...] = _mlp_mu(s_ref, w1_ref, b1_ref, w2_ref, b2_ref, w3_ref, b3_ref)


def _actor_mu_logp_kernel(s_ref, a_ref,
                          w1_ref, b1_ref, w2_ref, b2_ref, w3_ref, b3_ref,
                          eye_ref, inv_std_ref, const_ref,
                          mu_ref, logp_ref):
    mu = _mlp_mu(s_ref, w1_ref, b1_ref, w2_ref, b2_ref, w3_ref, b3_ref)
    mu_ref[...] = mu                                                   # (ACT, TB) lane-dense

    # Transpose the natural-layout (TB, ACT) actions block on the MXU via an identity
    # matmul (same A·Bᵀ pattern as layer 1) -> (ACT, TB); keeps logp output lane-dense.
    a_t = lax.dot_general(eye_ref[...], a_ref[...], _NT,
                          preferred_element_type=jnp.float32)          # (ACT, TB)
    z = (a_t - mu) * inv_std_ref[...]                                  # (ACT, TB)
    # Normal log-prob summed over action dims; the state-independent term
    # (sum(log_std) + ACT*0.5*log(2*pi)) is precomputed once in the wrapper.
    logp_ref[...] = -0.5 * jnp.sum(z * z, axis=0, keepdims=True) - const_ref[...]   # (1, TB)


def _round_up(x, m):
    return ((x + m - 1) // m) * m


def _batch_tiling(B):
    """Batch (lane) tile. Big tiles amortize the ~0.35 us per-grid-step overhead; for
    large B keep >= 2 steps so both v7x TensorCores get work. Last block may be ragged."""
    if B <= 128:
        return B                                   # single full-dim block
    return min(_TB_CAP, _round_up((B + 1) // 2, 128))


def _run_actor(state, actions, params):
    w1, b1, w2, b2, w3, b3, log_std = params
    B = state.shape[0]
    TB = _batch_tiling(B)
    grid = (pl.cdiv(B, TB),)        # ragged last block: Pallas clips the DMAs; garbage
                                    # columns never cross batch and are discarded.

    batch_in_map = lambda i: (i, 0)      # (TB, feat) natural-layout input blocks
    batch_out_map = lambda i: (0, i)     # (feat, TB) lane-dense output blocks
    const_map = lambda i: (0, 0)         # VMEM-resident across all grid steps

    weight_specs = [
        pl.BlockSpec((HIDDEN, OBS_DIM), const_map), pl.BlockSpec((HIDDEN, 1), const_map),
        pl.BlockSpec((HIDDEN, HIDDEN), const_map), pl.BlockSpec((HIDDEN, 1), const_map),
        pl.BlockSpec((ACT_DIM, HIDDEN), const_map), pl.BlockSpec((ACT_DIM, 1), const_map),
    ]
    state_spec = pl.BlockSpec((TB, OBS_DIM), batch_in_map)
    mu_spec = pl.BlockSpec((ACT_DIM, TB), batch_out_map)
    cp = pltpu.CompilerParams(dimension_semantics=("parallel",))

    if actions is None:
        mu_t = pl.pallas_call(
            _actor_mu_kernel,
            out_shape=jax.ShapeDtypeStruct((ACT_DIM, B), jnp.float32),
            grid=grid,
            in_specs=[state_spec] + weight_specs,
            out_specs=mu_spec,
            compiler_params=cp,
        )(state, w1, b1, w2, b2, w3, b3)
        return mu_t.T, None

    # State-independent log-prob pieces hoisted out of the kernel (computed once, tiny).
    inv_std = jnp.exp(-log_std)                                          # (ACT, 1)
    const = jnp.sum(log_std).reshape(1, 1) + ACT_DIM * _HALF_LOG_2PI     # (1, 1)
    eye_act = jnp.eye(ACT_DIM, dtype=jnp.float32)                        # (ACT, ACT)

    mu_t, logp = pl.pallas_call(
        _actor_mu_logp_kernel,
        out_shape=(jax.ShapeDtypeStruct((ACT_DIM, B), jnp.float32),
                   jax.ShapeDtypeStruct((1, B), jnp.float32)),
        grid=grid,
        in_specs=[state_spec, pl.BlockSpec((TB, ACT_DIM), batch_in_map)]
                 + weight_specs
                 + [pl.BlockSpec((ACT_DIM, ACT_DIM), const_map),
                    pl.BlockSpec((ACT_DIM, 1), const_map),
                    pl.BlockSpec((1, 1), const_map)],
        out_specs=(mu_spec, pl.BlockSpec((1, TB), batch_out_map)),
        compiler_params=cp,
    )(state, actions, w1, b1, w2, b2, w3, b3, eye_act, inv_std, const)
    return mu_t.T, logp[0]


def actor_forward(state, actions, params):
    """Mirrors Actor.forward(state, actions): returns (policy, log_probability).

    `policy` is represented by its (mu, std) parameters; std is the state-independent
    (ACT,) vector exp(log_std) (Normal(mu, std) broadcasts, so no (B, ACT) copy is made).
    If actions is None, log_probability is None (matching the PyTorch module).
    """
    mu, logp = _run_actor(state, actions, params)
    std = jnp.exp(params[6][:, 0])
    return (mu, std), logp


def init_params(key):
    """Weights are stored [out, in]; biases / log_std stored [out, 1] (lane-broadcast ready)."""
    k1, k2, k3 = jax.random.split(key, 3)

    def linear_init(k, fan_in, fan_out):
        bound = 1.0 / math.sqrt(fan_in)
        kw, kb = jax.random.split(k)
        w = jax.random.uniform(kw, (fan_out, fan_in), jnp.float32, -bound, bound)
        b = jax.random.uniform(kb, (fan_out, 1), jnp.float32, -bound, bound)
        return w, b

    w1, b1 = linear_init(k1, OBS_DIM, HIDDEN)
    w2, b2 = linear_init(k2, HIDDEN, HIDDEN)
    w3, b3 = linear_init(k3, HIDDEN, ACT_DIM)
    log_std = jnp.full((ACT_DIM, 1), -0.5, jnp.float32)
    return (w1, b1, w2, b2, w3, b3, log_std)


def _reference(state, actions, params):
    w1, b1, w2, b2, w3, b3, log_std = params
    h1 = jnp.tanh(state @ w1.T + b1[:, 0])
    h2 = jnp.tanh(h1 @ w2.T + b2[:, 0])
    mu = h2 @ w3.T + b3[:, 0]
    std = jnp.exp(log_std[:, 0])
    z = (actions - mu) / std
    lp = -0.5 * z * z - log_std[:, 0] - 0.5 * jnp.log(2.0 * jnp.pi)
    return mu, std, jnp.sum(lp, axis=-1)


if __name__ == "__main__":
    key = jax.random.PRNGKey(0)
    kp, ks, ka, ks2, ka2 = jax.random.split(key, 5)

    params = init_params(kp)

    # --- small batch: single grid step, block == full batch -------------------
    B = 8
    state = jax.random.normal(ks, (B, OBS_DIM), jnp.float32)
    actions = jax.random.normal(ka, (B, ACT_DIM), jnp.float32)

    (mu, std), logp = actor_forward(state, actions, params)
    jax.block_until_ready((mu, std, logp))

    (mu2, std2), logp_none = actor_forward(state, None, params)
    jax.block_until_ready((mu2, std2))
    assert logp_none is None

    mu_r, std_r, logp_r = _reference(state, actions, params)
    assert jnp.allclose(mu, mu_r, atol=1e-5), "mu mismatch"
    assert jnp.allclose(mu2, mu_r, atol=1e-5), "mu (no-actions path) mismatch"
    assert jnp.allclose(std, std_r, atol=1e-6), "std mismatch"
    assert jnp.allclose(logp, logp_r, atol=1e-5), "log_prob mismatch"

    # --- larger batch: exercises the batch grid + ragged last block (TB=128, grid=(2,)) ---
    B2 = 160
    state2 = jax.random.normal(ks2, (B2, OBS_DIM), jnp.float32)
    actions2 = jax.random.normal(ka2, (B2, ACT_DIM), jnp.float32)
    (mu3, std3), logp3 = actor_forward(state2, actions2, params)
    jax.block_until_ready((mu3, std3, logp3))
    mu3_r, std3_r, logp3_r = _reference(state2, actions2, params)
    assert jnp.allclose(mu3, mu3_r, atol=1e-5), "mu (grid path) mismatch"
    assert jnp.allclose(std3, std3_r, atol=1e-6), "std (grid path) mismatch"
    assert jnp.allclose(logp3, logp3_r, atol=1e-5), "log_prob (grid path) mismatch"

    print("KERNEL_OK")
</pallas_src>

<mosaic_0001>
module attributes {stable_mosaic.version = 11 : i64} {
  func.func @_actor_mu_logp_kernel(%arg0: i32, %arg1: memref<8x16xf32, #tpu.memory_space<vmem>>, %arg2: memref<8x4xf32, #tpu.memory_space<vmem>>, %arg3: memref<32x16xf32, #tpu.memory_space<vmem>>, %arg4: memref<32x1xf32, #tpu.memory_space<vmem>>, %arg5: memref<32x32xf32, #tpu.memory_space<vmem>>, %arg6: memref<32x1xf32, #tpu.memory_space<vmem>>, %arg7: memref<4x32xf32, #tpu.memory_space<vmem>>, %arg8: memref<4x1xf32, #tpu.memory_space<vmem>>, %arg9: memref<4x4xf32, #tpu.memory_space<vmem>>, %arg10: memref<4x1xf32, #tpu.memory_space<vmem>>, %arg11: memref<1x1xf32, #tpu.memory_space<vmem>>, %arg12: memref<4x8xf32, #tpu.memory_space<vmem>>, %arg13: memref<1x8xf32, #tpu.memory_space<vmem>>) attributes {dimension_semantics = [#tpu.dimension_semantics<parallel>], iteration_bounds = array<i64: 1>, scalar_prefetch = 0 : i64, scratch_operands = 0 : i64, tpu.core_type = #tpu.core_type<tc>, window_params = [{transform_indices = @transform_0, window_bounds = array<i64: 8, 16>}, {transform_indices = @transform_1, window_bounds = array<i64: 8, 4>}, {pipeline_mode = #tpu.pipeline_mode<synchronous>, transform_indices = @transform_2, window_bounds = array<i64: 32, 16>}, {pipeline_mode = #tpu.pipeline_mode<synchronous>, transform_indices = @transform_3, window_bounds = array<i64: 32, 1>}, {pipeline_mode = #tpu.pipeline_mode<synchronous>, transform_indices = @transform_4, window_bounds = array<i64: 32, 32>}, {pipeline_mode = #tpu.pipeline_mode<synchronous>, transform_indices = @transform_5, window_bounds = array<i64: 32, 1>}, {pipeline_mode = #tpu.pipeline_mode<synchronous>, transform_indices = @transform_6, window_bounds = array<i64: 4, 32>}, {pipeline_mode = #tpu.pipeline_mode<synchronous>, transform_indices = @transform_7, window_bounds = array<i64: 4, 1>}, {pipeline_mode = #tpu.pipeline_mode<synchronous>, transform_indices = @transform_8, window_bounds = array<i64: 4, 4>}, {pipeline_mode = #tpu.pipeline_mode<synchronous>, transform_indices = @transform_9, window_bounds = array<i64: 4, 1>}, {pipeline_mode = #tpu.pipeline_mode<synchronous>, transform_indices = @transform_10, window_bounds = array<i64: 1, 1>}, {transform_indices = @transform_11, window_bounds = array<i64: 4, 8>}, {transform_indices = @transform_12, window_bounds = array<i64: 1, 8>}]} {
    %c0 = arith.constant 0 : index
    %c0_0 = arith.constant 0 : index
    %0 = vector.load %arg1[%c0, %c0_0] : memref<8x16xf32, #tpu.memory_space<vmem>>, vector<8x16xf32>
    %c0_1 = arith.constant 0 : index
    %c0_2 = arith.constant 0 : index
    %1 = vector.load %arg3[%c0_1, %c0_2] : memref<32x16xf32, #tpu.memory_space<vmem>>, vector<32x16xf32>
    %cst = arith.constant dense<0.000000e+00> : vector<32x8xf32>
    %2 = tpu.matmul %1, %0, %cst {dimension_numbers = #tpu.dot_dimension_numbers<[1], [1], [0], [0], [0, 0, 1, 0], [], []>} : vector<32x16xf32>, vector<8x16xf32>, vector<32x8xf32> -> vector<32x8xf32>
    %c0_3 = arith.constant 0 : index
    %c0_4 = arith.constant 0 : index
    %3 = vector.load %arg4[%c0_3, %c0_4] : memref<32x1xf32, #tpu.memory_space<vmem>>, vector<32x1xf32>
    %4 = vector.broadcast %3 : vector<32x1xf32> to vector<32x8xf32>
    %5 = arith.addf %2, %4 : vector<32x8xf32>
    %6 = math.tanh %5 : vector<32x8xf32>
    %c0_5 = arith.constant 0 : index
    %c0_6 = arith.constant 0 : index
    %7 = vector.load %arg5[%c0_5, %c0_6] : memref<32x32xf32, #tpu.memory_space<vmem>>, vector<32x32xf32>
    %cst_7 = arith.constant dense<0.000000e+00> : vector<32x8xf32>
    %8 = tpu.matmul %7, %6, %cst_7 {dimension_numbers = #tpu.dot_dimension_numbers<[1], [0], [0], [1], [0, 0, 1, 1], [], []>} : vector<32x32xf32>, vector<32x8xf32>, vector<32x8xf32> -> vector<32x8xf32>
    %c0_8 = arith.constant 0 : index
    %c0_9 = arith.constant 0 : index
    %9 = vector.load %arg6[%c0_8, %c0_9] : memref<32x1xf32, #tpu.memory_space<vmem>>, vector<32x1xf32>
    %10 = vector.broadcast %9 : vector<32x1xf32> to vector<32x8xf32>
    %11 = arith.addf %8, %10 : vector<32x8xf32>
    %12 = math.tanh %11 : vector<32x8xf32>
    %c0_10 = arith.constant 0 : index
    %c0_11 = arith.constant 0 : index
    %13 = vector.load %arg7[%c0_10, %c0_11] : memref<4x32xf32, #tpu.memory_space<vmem>>, vector<4x32xf32>
    %cst_12 = arith.constant dense<0.000000e+00> : vector<4x8xf32>
    %14 = tpu.matmul %13, %12, %cst_12 {dimension_numbers = #tpu.dot_dimension_numbers<[1], [0], [0], [1], [0, 0, 1, 1], [], []>} : vector<4x32xf32>, vector<32x8xf32>, vector<4x8xf32> -> vector<4x8xf32>
    %c0_13 = arith.constant 0 : index
    %c0_14 = arith.constant 0 : index
    %15 = vector.load %arg8[%c0_13, %c0_14] : memref<4x1xf32, #tpu.memory_space<vmem>>, vector<4x1xf32>
    %16 = vector.broadcast %15 : vector<4x1xf32> to vector<4x8xf32>
    %17 = arith.addf %14, %16 : vector<4x8xf32>
    %c0_15 = arith.constant 0 : index
    %c0_16 = arith.constant 0 : index
    %18 = vector.load %arg12[%c0_15, %c0_16] : memref<4x8xf32, #tpu.memory_space<vmem>>, vector<4x8xf32>
    tpu.vector_store %arg12[%c0_15, %c0_16], %17 {strides = array<i32>} : memref<4x8xf32, #tpu.memory_space<vmem>>, vector<4x8xf32>,
    %c0_17 = arith.constant 0 : index
    %c0_18 = arith.constant 0 : index
    %19 = vector.load %arg9[%c0_17, %c0_18] : memref<4x4xf32, #tpu.memory_space<vmem>>, vector<4x4xf32>
    %c0_19 = arith.constant 0 : index
    %c0_20 = arith.constant 0 : index
    %20 = vector.load %arg2[%c0_19, %c0_20] : memref<8x4xf32, #tpu.memory_space<vmem>>, vector<8x4xf32>
    %cst_21 = arith.constant dense<0.000000e+00> : vector<4x8xf32>
    %21 = tpu.matmul %19, %20, %cst_21 {dimension_numbers = #tpu.dot_dimension_numbers<[1], [1], [0], [0], [0, 0, 1, 0], [], []>} : vector<4x4xf32>, vector<8x4xf32>, vector<4x8xf32> -> vector<4x8xf32>
    %22 = arith.subf %21, %17 : vector<4x8xf32>
    %c0_22 = arith.constant 0 : index
    %c0_23 = arith.constant 0 : index
    %23 = vector.load %arg10[%c0_22, %c0_23] : memref<4x1xf32, #tpu.memory_space<vmem>>, vector<4x1xf32>
    %24 = vector.broadcast %23 : vector<4x1xf32> to vector<4x8xf32>
    %25 = arith.mulf %22, %24 : vector<4x8xf32>
    %26 = arith.mulf %25, %25 : vector<4x8xf32>
    %cst_24 = arith.constant dense<0.000000e+00> : vector<8xf32>
    %27 = vector.multi_reduction <add>, %26, %cst_24 [0] : vector<4x8xf32> to vector<8xf32>
    %28 = vector.shape_cast %27 : vector<8xf32> to vector<1x8xf32>
    %cst_25 = arith.constant -5.000000e-01 : f32
    %29 = vector.broadcast %cst_25 : f32 to vector<1x8xf32>
    %30 = arith.mulf %29, %28 : vector<1x8xf32>
    %c0_26 = arith.constant 0 : index
    %c0_27 = arith.constant 0 : index
    %31 = vector.load %arg11[%c0_26, %c0_27] : memref<1x1xf32, #tpu.memory_space<vmem>>, vector<1x1xf32>
    %32 = vector.broadcast %31 : vector<1x1xf32> to vector<1x8xf32>
    %33 = arith.subf %30, %32 : vector<1x8xf32>
    %c0_28 = arith.constant 0 : index
    %c0_29 = arith.constant 0 : index
    %34 = vector.load %arg13[%c0_28, %c0_29] : memref<1x8xf32, #tpu.memory_space<vmem>>, vector<1x8xf32>
    tpu.vector_store %arg13[%c0_28, %c0_29], %33 {strides = array<i32>} : memref<1x8xf32, #tpu.memory_space<vmem>>, vector<1x8xf32>,
    return
  }
  func.func @transform_0(%arg0: i32) -> (i32, i32) {
    %c0_i32 = arith.constant 0 : i32
    %c0_i32_0 = arith.constant 0 : i32
    return %arg0, %c0_i32 : i32, i32
  }
  func.func @transform_1(%arg0: i32) -> (i32, i32) {
    %c0_i32 = arith.constant 0 : i32
    %c0_i32_0 = arith.constant 0 : i32
    return %arg0, %c0_i32 : i32, i32
  }
  func.func @transform_2(%arg0: i32) -> (i32, i32) {
    %c0_i32 = arith.constant 0 : i32
    %c0_i32_0 = arith.constant 0 : i32
    %c0_i32_1 = arith.constant 0 : i32
    return %c0_i32, %c0_i32_0 : i32, i32
  }
  func.func @transform_3(%arg0: i32) -> (i32, i32) {
    %c0_i32 = arith.constant 0 : i32
    %c0_i32_0 = arith.constant 0 : i32
    %c0_i32_1 = arith.constant 0 : i32
    return %c0_i32, %c0_i32_0 : i32, i32
  }
  func.func @transform_4(%arg0: i32) -> (i32, i32) {
    %c0_i32 = arith.constant 0 : i32
    %c0_i32_0 = arith.constant 0 : i32
    %c0_i32_1 = arith.constant 0 : i32
    return %c0_i32, %c0_i32_0 : i32, i32
  }
  func.func @transform_5(%arg0: i32) -> (i32, i32) {
    %c0_i32 = arith.constant 0 : i32
    %c0_i32_0 = arith.constant 0 : i32
    %c0_i32_1 = arith.constant 0 : i32
    return %c0_i32, %c0_i32_0 : i32, i32
  }
  func.func @transform_6(%arg0: i32) -> (i32, i32) {
    %c0_i32 = arith.constant 0 : i32
    %c0_i32_0 = arith.constant 0 : i32
    %c0_i32_1 = arith.constant 0 : i32
    return %c0_i32, %c0_i32_0 : i32, i32
  }
  func.func @transform_7(%arg0: i32) -> (i32, i32) {
    %c0_i32 = arith.constant 0 : i32
    %c0_i32_0 = arith.constant 0 : i32
    %c0_i32_1 = arith.constant 0 : i32
    return %c0_i32, %c0_i32_0 : i32, i32
  }
  func.func @transform_8(%arg0: i32) -> (i32, i32) {
    %c0_i32 = arith.constant 0 : i32
    %c0_i32_0 = arith.constant 0 : i32
    %c0_i32_1 = arith.constant 0 : i32
    return %c0_i32, %c0_i32_0 : i32, i32
  }
  func.func @transform_9(%arg0: i32) -> (i32, i32) {
    %c0_i32 = arith.constant 0 : i32
    %c0_i32_0 = arith.constant 0 : i32
    %c0_i32_1 = arith.constant 0 : i32
    return %c0_i32, %c0_i32_0 : i32, i32
  }
  func.func @transform_10(%arg0: i32) -> (i32, i32) {
    %c0_i32 = arith.constant 0 : i32
    %c0_i32_0 = arith.constant 0 : i32
    %c0_i32_1 = arith.constant 0 : i32
    return %c0_i32, %c0_i32_0 : i32, i32
  }
  func.func @transform_11(%arg0: i32) -> (i32, i32) {
    %c0_i32 = arith.constant 0 : i32
    %c0_i32_0 = arith.constant 0 : i32
    return %c0_i32, %arg0 : i32, i32
  }
  func.func @transform_12(%arg0: i32) -> (i32, i32) {
    %c0_i32 = arith.constant 0 : i32
    %c0_i32_0 = arith.constant 0 : i32
    return %c0_i32, %arg0 : i32, i32
  }
}

</mosaic_0001>

<bundles_post_ra>
// kernel: tpu_custom_call.1
= control target key start
LH: loop header
LB: loop body
LE: loop exit
PB: predicated region body
PF: predicated region fallthrough
CT: control target
= control target key end

     0   :  { %s862_s0 = inlined_call_operand.vmem [shape: f32[8,16], index: 0, kind: input, shape index: {}]   ;;  %s863_s1 = inlined_call_operand.vmem [shape: f32[8,4], index: 1, kind: input, shape index: {}]   ;;  %s864_s2 = inlined_call_operand.vmem [shape: f32[32,16], index: 2, kind: input, shape index: {}]   ;;  %s865_s3 = inlined_call_operand.vmem [shape: f32[32,1], index: 3, kind: input, shape index: {}]   ;;  %s866_s4 = inlined_call_operand.vmem [shape: f32[32,32], index: 4, kind: input, shape index: {}]   ;;  %s867_s5 = inlined_call_operand.vmem [shape: f32[32,1], index: 5, kind: input, shape index: {}]   ;;  %s868_s6 = inlined_call_operand.vmem [shape: f32[4,32], index: 6, kind: input, shape index: {}]   ;;  %s869_s7 = inlined_call_operand.vmem [shape: f32[4,1], index: 7, kind: input, shape index: {}]   ;;  %s870_s8 = inlined_call_operand.vmem [shape: f32[4,4], index: 8, kind: input, shape index: {}]   ;;  %s871_s9 = inlined_call_operand.vmem [shape: f32[4,1], index: 9, kind: input, shape index: {}]   ;;  %s872_s10 = inlined_call_operand.<no memory space> [shape: f32[1,1], index: 10, kind: input, shape index: {}]   ;;  %s873_s11 = inlined_call_operand.hbm [shape: f32[4,8], index: 11, kind: output, shape index: {0}]   ;;  %s874_s12 = inlined_call_operand.hbm [shape: f32[1,8], index: 12, kind: output, shape index: {1}]  }
   0x1   :  { %v18_v0 = vstv %s872_s10 }
   0x2   :  { %19 = vst [vmem:[#allocation2] sm:$0x1] %v18_v0 }
   0x3   :  { %20 = vsyncpa [#allocation4], 0  ;;  %v44_v1 = vld [vmem:[%s862_s0] sm:$0xff]  ;;  %vm73_vm0 = vcmask 130048   ;;  %v46_v4 = vld [vmem:[%s864_s2 + $0x8] sm:$0xff]  ;;  %v683_v5 = vmov 0  }
   0x4   :  { %v45_v2 = vld [vmem:[%s864_s2] sm:$0xff]  ;;  %559 = vmatprep.subr.msk.mxu0 %vm73_vm0, %v44_v1  ;;  %617 = vset.pattern.permute.xlu0 %v683_v5  ;;  %v51_v6 = vld [vmem:[%s865_s3 + $0x10] sm:$0xff]  ;;  %v50_v8 = vld [vmem:[%s865_s3 + $0x8] sm:$0xff] }
   0x5   :  { %561 = vmatprep.mubr.msk.f32.mxu0 %vm73_vm0, %v45_v2  ;;  %v49_v3 = vld [vmem:[%s865_s3] sm:$0xff]  ;;  %560 = vmatpush3.xpose.msk.msra.mxu0 %vm73_vm0, %v44_v1  ;;  %v47_v7 = vld [vmem:[%s864_s2 + $0x10] sm:$0xff]  ;;  %v52_v9 = vld [vmem:[%s865_s3 + $0x18] sm:$0xff] }
   0x6   :  { %55 = vperm.xlu0 %617, %v49_v3   ;;  %618 = vset.pattern.permute.xlu1 %v683_v5 }
   0x7   :  { %65 = vperm.xlu1 %618, %v51_v6  }
   0x8   :  { %562 = vmatmul.mubr.msk.f32.vlgmr.msra.gmra.mrb[0].mxu0 %vm73_vm0, %v46_v4 }
   0x9   :  { %21 = vsyncpa [#allocation6], 0  ;;  %564 = vmatprep.mubr.msk.f32.mxu0 %vm73_vm0, %v47_v7  ;;  %v48_v10 = vld [vmem:[%s864_s2 + $0x18] sm:$0xff]  ;;  %v182_v11 = vld [vmem:[%s867_s5] sm:$0xff]  ;;  %vm206_vm1 = vcmask 261120   ;;  %v684_v40 = vmov 0.0|0.0  }
   0xa   :  { %60 = vperm.xlu0 %617, %v50_v8   ;;  %v183_v12 = vld [vmem:[%s867_s5 + $0x8] sm:$0xff]  ;;  %v184_v13 = vld [vmem:[%s867_s5 + $0x10] sm:$0xff]  ;;  %v185_v14 = vld [vmem:[%s867_s5 + $0x18] sm:$0xff]  ;;  %605 = vmatprep.subr.bf16.mxu0 %v684_v40  ;;  %vm685_vm2 = vmmov 0   ;;  %v686_v41 = vmov 0.0   ;;  %vm392_vm3 = vcmask 31744  }
   0xb   :  { %70 = vperm.xlu1 %618, %v52_v9   ;;  %v309_v15 = vld [vmem:[%s869_s7] sm:$0xf]  ;;  %v179_v37 = vld [vmem:[%s866_s4 + $0x8] sm:$0xff]  ;;  %v180_v38 = vld [vmem:[%s866_s4 + $0x10] sm:$0xff]  ;;  %s687_s21 = smov [#allocation3]   ;;  %vm388_vm4 = vcmask 60416  }
   0xc   :  { %565 = vmatmul.mubr.msk.f32.gmra.mrb[2].mxu0 %vm73_vm0, %v48_v10  ;;  %v470_v16 = vld [vmem:[%s871_s9] sm:$0xf]  ;;  %v181_v39 = vld [vmem:[%s866_s4 + $0x18] sm:$0xff]  ;;  %s505_s22 = sshll.u32 %s687_s21, 4  ;;  %s506_s22 = int_to_ptr.vmem [resolvable:$true] %s505_s22 }
   0xd   :  { %v486_v17 = vld [vmem:[#allocation2] sm:$0x1]  ;;  %589 = vmatprep.mubr.msk.f32.mxu0 %vm685_vm2, %v686_v41  ;;  %p640_p1 = scmp.lt.s32.totalorder %s506_s22, %s506_s22 }
   0xe   :  { %188 = vperm.xlu0 %617, %v182_v11   ;;  %v178_v18 = vld [vmem:[%s866_s4] sm:$0xff] }
   0xf   :  { %193 = vperm.xlu1 %618, %v183_v12   ;;  %575 = vmatprep.mubr.msk.f32.mxu1 %vm206_vm1, %v178_v18  ;;  %v308_v60 = vld [vmem:[%s868_s6] sm:$0xf]  ;;  %s635_s6 = scalar_lea.vmem %s506_s22, 64 }
  0x10   :  { %v391_v61 = vld [vmem:[%s863_s1] sm:$0xff]  ;;  %p636_p0 = scmp.ne.s32.totalorder %s506_s22, %s635_s6  ;;  %p641_p2 = scmp.lt.s32.totalorder %s635_s6, %s635_s6 }
  0x11   :  { %v390_v62 = vld [vmem:[%s870_s8] sm:$0xf] }
  0x12   :  { %198 = vperm.xlu0 %617, %v184_v13   ;;  %p642_p3 = por %p641_p2, %p640_p1 }
  0x13   :  { %203 = vperm.xlu1 %618, %v185_v14  }
  0x14   :  { %p643_p4 = pnand %p642_p3, %p636_p0 }
  0x16   :  { %312 = vperm.xlu0 %617, %v309_v15  }
  0x17   :  { %473 = vperm.xlu1 %618, %v470_v16  }
  0x1a   :  { %489 = vperm.xlu0 %617, %v486_v17  }
  0x85   :  { %v56_v19 = vpop.permute.xlu0 %55 }
  0x86   :  { %v66_v20 = vpop.permute.xlu1 %65 }
  0x89   :  { %v61_v21 = vpop.permute.xlu0 %60 }
  0x8a   :  { %v71_v26 = vpop.permute.xlu1 %70 }
  0x8d   :  { %v189_v43 = vpop.permute.xlu0 %188 }
  0x8e   :  { %v194_v42 = vpop.permute.xlu1 %193 }
  0x91   :  { %v199_v50 = vpop.permute.xlu0 %198 }
  0x92   :  { %v204_v48 = vpop.permute.xlu1 %203 }
  0x95   :  { %v313_v63 = vpop.permute.xlu0 %312 }
  0xdb   :  { %v563_v22 = vpop.f32.mrb[0].mxu0 }
  0xdc   :  { %v161_v23 = vadd.f32 %v563_v22, %v61_v21  ;;  %v155_v24 = vpop.f32.mrb[1].mxu0 }
  0xdd   :  { %v156_v25 = vadd.f32 %v155_v24, %v56_v19 }
  0xde   :  { %619 = vtanh.f32 %v161_v23 }
  0xdf   :  { %621 = vtanh.f32 %v156_v25  ;;  %v566_v27 = vpop.f32.mrb[2].mxu0 }
  0xe0   :  { %v171_v28 = vadd.f32 %v566_v27, %v71_v26  ;;  %v165_v29 = vpop.f32.mrb[3].mxu0 }
  0xe1   :  { %v166_v30 = vadd.f32 %v165_v29, %v66_v20 }
  0xe2   :  { %623 = vtanh.f32 %v171_v28 }
  0xe3   :  { %625 = vtanh.f32 %v166_v30 }
  0xe8   :  { %v620_v31 = vpop.eup %619 }
  0xe9   :  { %v622_v32 = vpop.eup %621 }
  0xea   :  { %v597_v33 = vpack.c.bf16 %v620_v31, %v622_v32 }
  0xec   :  { %v624_v34 = vpop.eup %623  ;;  %598 = vmatprep.subr.bf16.mxu1 %v597_v33 }
  0xed   :  { %v626_v35 = vpop.eup %625  ;;  %600 = vmatpush3.bf16.msra.mxu1 %v597_v33 }
  0xee   :  { %v601_v36 = vpack.c.bf16 %v624_v34, %v626_v35 }
  0xf0   :  { %602 = vmatprep.subr.bf16.mxu1 %v601_v36 }
  0xf1   :  { %604 = vmatpush3.bf16.msra.mxu1 %v601_v36 }
  0xf4   :  { %576 = vmatmul.mubr.msk.f32.vlgmr.msra.gmra.mrb[0].mxu1 %vm206_vm1, %v179_v37 }
  0xf5   :  { %578 = vmatprep.mubr.msk.f32.mxu1 %vm206_vm1, %v180_v38 }
  0xf8   :  { %579 = vmatmul.mubr.msk.f32.gmra.mrb[2].mxu1 %vm206_vm1, %v181_v39 }
 0x1c7   :  { %v577_v44 = vpop.f32.mrb[0].mxu1 }
 0x1c8   :  { %v291_v45 = vadd.f32 %v577_v44, %v194_v42  ;;  %v285_v46 = vpop.f32.mrb[1].mxu1 }
 0x1c9   :  { %v286_v47 = vadd.f32 %v285_v46, %v189_v43 }
 0x1ca   :  { %627 = vtanh.f32 %v291_v45 }
 0x1cb   :  { %629 = vtanh.f32 %v286_v47  ;;  %v580_v49 = vpop.f32.mrb[2].mxu1 }
 0x1cc   :  { %v301_v51 = vadd.f32 %v580_v49, %v204_v48  ;;  %v295_v52 = vpop.f32.mrb[3].mxu1 }
 0x1cd   :  { %v296_v53 = vadd.f32 %v295_v52, %v199_v50 }
 0x1ce   :  { %631 = vtanh.f32 %v301_v51 }
 0x1cf   :  { %633 = vtanh.f32 %v296_v53 }
 0x1d4   :  { %v628_v54 = vpop.eup %627 }
 0x1d5   :  { %v630_v55 = vpop.eup %629 }
 0x1d6   :  { %v606_v56 = vpack.c.bf16 %v628_v54, %v630_v55 }
 0x1d8   :  { %v632_v57 = vpop.eup %631  ;;  %607 = vmatpush3.bf16.msra.mxu0 %v606_v56 }
 0x1d9   :  { %v634_v58 = vpop.eup %633  ;;  %608 = vmatprep.subr.bf16.mxu0 %v684_v40 }
 0x1da   :  { %v609_v59 = vpack.c.bf16 %v632_v57, %v634_v58 }
 0x1dc   :  { %610 = vmatpush3.bf16.msra.mxu0 %v609_v59 }
 0x1dd   :  { %592 = vmatprep.subr.mxu0 %v686_v41 }
 0x1df   :  { %590 = vmatmul.mubr.msk.f32.vlgmr.msra.gmra.mrb[4].mxu0 %vm206_vm1, %v308_v60 }
 0x1e0   :  { %594 = vmatprep.mubr.msk.f32.mxu0 %vm685_vm2, %v686_v41 }
 0x1e5   :  { %593 = vmatpush3.xpose.msk.msra.mxu0 %vm392_vm3, %v391_v61 }
 0x1e8   :  { %595 = vmatmul.mubr.msk.f32.vlgmr.msra.gmra.mrb[6].mxu0 %vm392_vm3, %v390_v62 }
 0x2b2   :  { %v384_v0 = vpop.f32.mrb[4].mxu0 }
 0x2b3   :  { %v385_v1 = vadd.f32 %v384_v0, %v313_v63  ;;  %v591_v2 = vpop.f32.mrb[5].mxu0 }
 0x2b5   :  { %389 = vst.msk [vmem:[#allocation3] sm:$0xf] %vm388_vm4, %v385_v1 }
 0x2b6   :  { %646 = shalt.err (!%p643_p4)
}
 0x2b7   :  { %s647_s23 = scalar_lea.hbm %s873_s11, 64 }
 0x2b8   :  { %p648_p5 = scmp.ne.s32.totalorder %s873_s11, %s647_s23  ;;  %p651_p6 = scmp.lt.u32.totalorder %s647_s23, %s873_s11 }
 0x2ba   :  { %p653_p7 = pnand %p651_p6, %p648_p5 }
 0x2bc   :  { %656 = shalt.err (!%p653_p7)
}
 0x2bd   :  { %508 = dma.vmem_to_hbm [thread:$0]  %s506_s22, 64, %s873_s11, [#allocation4]   ;;  %v465_v3 = vpop.f32.mrb[6].mxu0  ;;  %v474_v6 = vpop.permute.xlu1 %473  ;;  %v492_v10 = vlaneseq  ;;  %vm497_vm5 = vcmask 57344  }
 0x2be   :  { %v469_v4 = vsub.f32 %v465_v3, %v385_v1  ;;  %v596_v5 = vpop.f32.mrb[7].mxu0  ;;  %v490_v18 = vpop.permute.xlu0 %489  ;;  %s688_s28 = smov [#allocation5]  }
 0x2bf   :  { %v493_v13 = vshrl.u32 %v492_v10, 7  ;;  %s515_s11 = sshll.u32 %s688_s28, 4  ;;  %s516_s11 = int_to_ptr.vmem [resolvable:$true] %s515_s11 }
 0x2c0   :  { %v476_v7 = vmul.f32 %v474_v6, %v469_v4  ;;  %s657_s10 = scalar_lea.vmem %s516_s11, 16  ;;  %s661_s29 = scalar_lea.vmem %s516_s11, 32 }
 0x2c1   :  { %v494_v16 = vsub.s32 0, %v493_v13  ;;  %p658_p8 = scmp.ne.s32.totalorder %s516_s11, %s657_s10  ;;  %p662_p9 = scmp.lt.s32.totalorder %s516_s11, %s516_s11 }
 0x2c2   :  { %v477_v8 = vmul.f32 %v476_v7, %v476_v7  ;;  %p663_p10 = scmp.lt.s32.totalorder %s661_s29, %s657_s10 }
 0x2c3   :  { %v495_v20 = vrot.slane %v490_v18, %v494_v16 }
 0x2c4   :  { %v478_v9 = vsel %vm388_vm4, %v477_v8, 0.0  ;;  %p664_p11 = por %p663_p10, %p662_p9 }
 0x2c5   :  { %v479_v11 = vrot.slane %v478_v9, 4 }
 0x2c6   :  { %p665_p12 = pnand %p664_p11, %p658_p8 }
 0x2c7   :  { %v480_v12 = vadd.f32 %v479_v11, %v478_v9 }
 0x2c9   :  { %v481_v14 = vrot.slane %v480_v12, 2 }
 0x2cb   :  { %v482_v15 = vadd.f32 %v481_v14, %v480_v12 }
 0x2cd   :  { %v483_v17 = vrot.slane %v482_v15, 1 }
 0x2cf   :  { %v484_v19 = vadd.f32 %v483_v17, %v482_v15 }
 0x2d1   :  { %v485_v21 = vmul.f32 -0.5, %v484_v19 }
 0x2d3   :  { %v496_v22 = vsub.f32 %v485_v21, %v495_v20 }
 0x2d5   :  { %498 = vst.msk [vmem:[#allocation5] sm:$0x1] %vm497_vm5, %v496_v22 }
 0x2d6   :  { %668 = shalt.err (!%p665_p12)
}
 0x2d7   :  { %s669_s5 = scalar_lea.hbm %s874_s12, 16 }
 0x2d8   :  { %p670_p13 = scmp.ne.s32.totalorder %s874_s12, %s669_s5  ;;  %p673_p0 = scmp.lt.u32.totalorder %s669_s5, %s874_s12 }
 0x2da   :  { %p675_p1 = pnand %p673_p0, %p670_p13 }
 0x2dc   :  { %678 = shalt.err (!%p675_p1)
}
 0x2dd   :  { %518 = dma.vmem_to_hbm [thread:$0]  %s516_s11, 16, %s874_s12, [#allocation6]  }
 0x2de   :  { %679 = dma.done.wait [#allocation4], 64  }
 0x2df   :  { %680 = vsyncadd [#allocation4], 4294967232 }
 0x2e0   :  { %681 = dma.done.wait [#allocation6], 16  }
 0x2e1   :  { %682 = vsyncadd [#allocation6], 4294967280 }
 0x2e2   :  { %525 = vsyncpa [#allocation4], 1 }
 0x2e3   :  { %526 = vsyncpa [#allocation6], 1 }

</bundles_post_ra>
